<compile_context>
chip_gen: v6e
topology: v6e:2x2x1
jax: 0.10.0
libtpu: 0.0.40
codegen_flags: <defaults>
</compile_context>

<pallas_src>
import functools

import jax
import jax.numpy as jnp
from jax.experimental import pallas as pl
from jax.experimental.pallas import tpu as pltpu

GAMMA = 1.5
ALPHA = 0.25

LANES = 128
SUBLANES = 8
MAX_BLOCK_ROWS = 2048   # (2048, 128) f32 = 1 MiB per input block
NUM_CORES = 2           # v7x megacore split; harmless serial loop on v5e/v6e


def _cdiv(a, b):
    return -(-a // b)


def _round_up(a, b):
    return _cdiv(a, b) * b


def _focal_loss_kernel(pred_ref, true_ref, out_ref, *, gamma, alpha):
    i = pl.program_id(1)  # reduction axis ("arbitrary")

    @pl.when(i == 0)
    def _():
        out_ref[...] = jnp.zeros_like(out_ref)

    x = pred_ref[...].astype(jnp.float32)
    y = true_ref[...].astype(jnp.float32)

    # Shared transcendental: exp(-|x|) feeds both BCE and sigmoid.
    e = jnp.exp(-jnp.abs(x))

    # BCEWithLogitsLoss(reduction='none') = max(x,0) - x*y + log(1+exp(-|x|))
    bce = jnp.maximum(x, 0.0) - x * y + jnp.log1p(e)

    # sigmoid(x):  x>=0 -> 1/(1+e);  x<0 -> e/(1+e)
    inv = 1.0 / (1.0 + e)
    p = jnp.where(x >= 0.0, inv, e * inv)

    # 1 - p_t  where  p_t = y*p + (1-y)*(1-p)
    t = p + y - 2.0 * p * y

    alpha_factor = y * alpha + (1.0 - y) * (1.0 - alpha)

    if gamma == 1.5:
        modulating = t * jnp.sqrt(t)        # t ** 1.5 without pow (no exp/log)
    elif gamma == 2.0:
        modulating = t * t
    elif gamma == 1.0:
        modulating = t
    else:
        modulating = t ** gamma

    loss = bce * alpha_factor * modulating

    # Vector accumulator: fold (block_rows, 128) -> (8, 128) with VPU adds only.
    sub, lanes = out_ref.shape
    out_ref[...] += loss.reshape(-1, sub, lanes).sum(axis=0)


def focal_loss(pred, true, *, gamma=GAMMA, alpha=ALPHA, reduction="mean"):
    """YOLOv5 FocalLoss(BCEWithLogitsLoss) forward. pred/true: same shape."""
    assert pred.shape == true.shape
    total = pred.size
    assert total > 0

    rows = _cdiv(total, LANES)

    # Split rows across cores only if there is at least one 8-row block each.
    ncores = NUM_CORES if rows >= NUM_CORES * SUBLANES else 1

    # Pick a big block, then shrink it to minimize padding for the chosen
    # number of grid steps.
    block_rows0 = min(MAX_BLOCK_ROWS, _round_up(_cdiv(rows, ncores), SUBLANES))
    steps = _cdiv(rows, ncores * block_rows0)
    block_rows = _round_up(_cdiv(rows, ncores * steps), SUBLANES)

    rows_padded = ncores * steps * block_rows
    padded_total = rows_padded * LANES
    pad = padded_total - total

    pred_flat = pred.reshape(-1)
    true_flat = true.reshape(-1)
    if pad:
        # (pred=100, true=1) contributes exactly 0 loss: bce ~ 0 and
        # (1 - p_t) == 0 exactly in f32, so no masking is needed.
        pred_flat = jnp.concatenate(
            [pred_flat, jnp.full((pad,), 100.0, dtype=pred_flat.dtype)])
        true_flat = jnp.concatenate(
            [true_flat, jnp.ones((pad,), dtype=true_flat.dtype)])

    # Keep the native dtype (e.g. bf16) in HBM; cast to f32 inside the kernel.
    pred2d = pred_flat.reshape(rows_padded, LANES)
    true2d = true_flat.reshape(rows_padded, LANES)

    kernel = functools.partial(
        _focal_loss_kernel, gamma=float(gamma), alpha=float(alpha))

    in_map = lambda c, i: (c * steps + i, 0)   # block index along rows

    partials = pl.pallas_call(
        kernel,
        out_shape=jax.ShapeDtypeStruct((ncores * SUBLANES, LANES), jnp.float32),
        grid_spec=pltpu.PrefetchScalarGridSpec(
            num_scalar_prefetch=0,
            grid=(ncores, steps),
            in_specs=[
                pl.BlockSpec((block_rows, LANES), in_map),
                pl.BlockSpec((block_rows, LANES), in_map),
            ],
            # Per-core resident (8,128) accumulator block.
            out_specs=pl.BlockSpec((SUBLANES, LANES), lambda c, i: (c, 0)),
        ),
        compiler_params=pltpu.CompilerParams(
            dimension_semantics=("parallel", "arbitrary"),
        ),
    )(pred2d, true2d)

    total_sum = jnp.sum(partials)
    if reduction == "mean":
        return total_sum / jnp.float32(total)
    elif reduction == "sum":
        return total_sum
    # TODO(synk): reduction='none' (per-element loss tensor output) not wired
    # through this wrapper; only 'mean' (BCEWithLogitsLoss default) and 'sum'.
    raise NotImplementedError(f"reduction={reduction!r} not supported")


def focal_loss_ref(pred, true, gamma=GAMMA, alpha=ALPHA):
    x = pred.astype(jnp.float32)
    y = true.astype(jnp.float32)
    bce = jnp.maximum(x, 0.0) - x * y + jnp.log1p(jnp.exp(-jnp.abs(x)))
    p = jax.nn.sigmoid(x)
    p_t = y * p + (1 - y) * (1 - p)
    af = y * alpha + (1 - y) * (1 - alpha)
    mf = (1.0 - p_t) ** gamma
    return jnp.mean(bce * af * mf)


if __name__ == "__main__":
    key = jax.random.PRNGKey(0)
    k1, k2, k3, k4 = jax.random.split(key, 4)

    # Case 1: NCHW f32, typical small YOLOv5-like logits tensor.
    shape = (2, 4, 16, 16)
    pred = jax.random.normal(k1, shape, dtype=jnp.float32) * 2.0
    true = (jax.random.uniform(k2, shape, dtype=jnp.float32) > 0.7).astype(
        jnp.float32)

    out = jax.block_until_ready(focal_loss(pred, true))
    ref = focal_loss_ref(pred, true)
    assert jnp.allclose(out, ref, rtol=1e-5, atol=1e-6), (out, ref)

    # Case 2: ragged size + bf16 inputs (exercises the zero-loss padding path
    # and native-dtype HBM traffic).
    shape2 = (3, 5, 13, 17)
    pred2 = (jax.random.normal(k3, shape2, dtype=jnp.float32) * 2.0).astype(
        jnp.bfloat16)
    true2 = (jax.random.uniform(k4, shape2, dtype=jnp.float32) > 0.7).astype(
        jnp.bfloat16)

    out2 = jax.block_until_ready(focal_loss(pred2, true2))
    ref2 = focal_loss_ref(pred2, true2)
    assert jnp.allclose(out2, ref2, rtol=1e-5, atol=1e-6), (out2, ref2)

    print("KERNEL_OK")
</pallas_src>

<mosaic_0001>
module attributes {stable_mosaic.version = 11 : i64} {
  func.func @_focal_loss_kernel(%arg0: i32, %arg1: i32, %arg2: memref<8x128xf32, #tpu.memory_space<vmem>>, %arg3: memref<8x128xf32, #tpu.memory_space<vmem>>, %arg4: memref<8x128xf32, #tpu.memory_space<vmem>>) attributes {dimension_semantics = [#tpu.dimension_semantics<parallel>, #tpu.dimension_semantics<arbitrary>], iteration_bounds = array<i64: 2, 1>, scalar_prefetch = 0 : i64, scratch_operands = 0 : i64, tpu.core_type = #tpu.core_type<tc>, window_params = [{transform_indices = @transform_0, window_bounds = array<i64: 8, 128>}, {transform_indices = @transform_1, window_bounds = array<i64: 8, 128>}, {transform_indices = @transform_2, window_bounds = array<i64: 8, 128>}]} {
    %c0_i32 = arith.constant 0 : i32
    %0 = arith.cmpi eq, %arg1, %c0_i32 : i32
    %1 = arith.extui %0 : i1 to i32
    %c0_i32_0 = arith.constant 0 : i32
    %2 = arith.cmpi ne, %1, %c0_i32_0 : i32
    scf.if %2 {
      %cst_17 = arith.constant 0.000000e+00 : f32
      %44 = vector.broadcast %cst_17 : f32 to vector<8x128xf32>
      %c0_18 = arith.constant 0 : index
      %c0_19 = arith.constant 0 : index
      %45 = vector.load %arg4[%c0_18, %c0_19] : memref<8x128xf32, #tpu.memory_space<vmem>>, vector<8x128xf32>
      tpu.vector_store %arg4[%c0_18, %c0_19], %44 {strides = array<i32>} : memref<8x128xf32, #tpu.memory_space<vmem>>, vector<8x128xf32>,
    } else {
    }
    %c0 = arith.constant 0 : index
    %c0_1 = arith.constant 0 : index
    %3 = vector.load %arg2[%c0, %c0_1] : memref<8x128xf32, #tpu.memory_space<vmem>>, vector<8x128xf32>
    %c0_2 = arith.constant 0 : index
    %c0_3 = arith.constant 0 : index
    %4 = vector.load %arg3[%c0_2, %c0_3] : memref<8x128xf32, #tpu.memory_space<vmem>>, vector<8x128xf32>
    %5 = math.absf %3 : vector<8x128xf32>
    %cst = arith.constant 0.000000e+00 : f32
    %6 = vector.broadcast %cst : f32 to vector<8x128xf32>
    %7 = arith.subf %6, %5 : vector<8x128xf32>
    %8 = math.exp %7 : vector<8x128xf32>
    %cst_4 = arith.constant 0.000000e+00 : f32
    %9 = vector.broadcast %cst_4 : f32 to vector<8x128xf32>
    %10 = arith.maximumf %3, %9 : vector<8x128xf32>
    %11 = arith.mulf %3, %4 : vector<8x128xf32>
    %12 = arith.subf %10, %11 : vector<8x128xf32>
    %13 = math.log1p %8 : vector<8x128xf32>
    %14 = arith.addf %12, %13 : vector<8x128xf32>
    %cst_5 = arith.constant 1.000000e+00 : f32
    %15 = vector.broadcast %cst_5 : f32 to vector<8x128xf32>
    %16 = arith.addf %15, %8 : vector<8x128xf32>
    %cst_6 = arith.constant 1.000000e+00 : f32
    %17 = vector.broadcast %cst_6 : f32 to vector<8x128xf32>
    %18 = arith.divf %17, %16 : vector<8x128xf32>
    %cst_7 = arith.constant 0.000000e+00 : f32
    %19 = vector.broadcast %cst_7 : f32 to vector<8x128xf32>
    %20 = arith.cmpf oge, %3, %19 : vector<8x128xf32>
    %21 = arith.mulf %8, %18 : vector<8x128xf32>
    %22 = arith.select %20, %18, %21 : vector<8x128xi1>, vector<8x128xf32>
    %23 = arith.addf %22, %4 : vector<8x128xf32>
    %cst_8 = arith.constant 2.000000e+00 : f32
    %24 = vector.broadcast %cst_8 : f32 to vector<8x128xf32>
    %25 = arith.mulf %24, %22 : vector<8x128xf32>
    %26 = arith.mulf %25, %4 : vector<8x128xf32>
    %27 = arith.subf %23, %26 : vector<8x128xf32>
    %cst_9 = arith.constant 2.500000e-01 : f32
    %28 = vector.broadcast %cst_9 : f32 to vector<8x128xf32>
    %29 = arith.mulf %4, %28 : vector<8x128xf32>
    %cst_10 = arith.constant 1.000000e+00 : f32
    %30 = vector.broadcast %cst_10 : f32 to vector<8x128xf32>
    %31 = arith.subf %30, %4 : vector<8x128xf32>
    %cst_11 = arith.constant 7.500000e-01 : f32
    %32 = vector.broadcast %cst_11 : f32 to vector<8x128xf32>
    %33 = arith.mulf %31, %32 : vector<8x128xf32>
    %34 = arith.addf %29, %33 : vector<8x128xf32>
    %35 = math.sqrt %27 : vector<8x128xf32>
    %36 = arith.mulf %27, %35 : vector<8x128xf32>
    %37 = arith.mulf %14, %34 : vector<8x128xf32>
    %38 = arith.mulf %37, %36 : vector<8x128xf32>
    %c0_12 = arith.constant 0 : index
    %c0_13 = arith.constant 0 : index
    %39 = vector.load %arg4[%c0_12, %c0_13] : memref<8x128xf32, #tpu.memory_space<vmem>>, vector<8x128xf32>
    %40 = vector.shape_cast %38 : vector<8x128xf32> to vector<1x8x128xf32>
    %cst_14 = arith.constant dense<0.000000e+00> : vector<8x128xf32>
    %41 = vector.multi_reduction <add>, %40, %cst_14 [0] : vector<1x8x128xf32> to vector<8x128xf32>
    %42 = arith.addf %39, %41 : vector<8x128xf32>
    %c0_15 = arith.constant 0 : index
    %c0_16 = arith.constant 0 : index
    %43 = vector.load %arg4[%c0_15, %c0_16] : memref<8x128xf32, #tpu.memory_space<vmem>>, vector<8x128xf32>
    tpu.vector_store %arg4[%c0_15, %c0_16], %42 {strides = array<i32>} : memref<8x128xf32, #tpu.memory_space<vmem>>, vector<8x128xf32>,
    return
  }
  func.func @transform_0(%arg0: i32, %arg1: i32) -> (i32, i32) {
    %c1_i32 = arith.constant 1 : i32
    %0 = arith.muli %arg0, %c1_i32 : i32
    %1 = arith.addi %0, %arg1 : i32
    %c0_i32 = arith.constant 0 : i32
    %c0_i32_0 = arith.constant 0 : i32
    return %1, %c0_i32 : i32, i32
  }
  func.func @transform_1(%arg0: i32, %arg1: i32) -> (i32, i32) {
    %c1_i32 = arith.constant 1 : i32
    %0 = arith.muli %arg0, %c1_i32 : i32
    %1 = arith.addi %0, %arg1 : i32
    %c0_i32 = arith.constant 0 : i32
    %c0_i32_0 = arith.constant 0 : i32
    return %1, %c0_i32 : i32, i32
  }
  func.func @transform_2(%arg0: i32, %arg1: i32) -> (i32, i32) {
    %c0_i32 = arith.constant 0 : i32
    %c0_i32_0 = arith.constant 0 : i32
    return %arg0, %c0_i32 : i32, i32
  }
}

</mosaic_0001>

<bundles_post_ra>
// kernel: tpu_custom_call.1
= control target key start
LH: loop header
LB: loop body
LE: loop exit
PB: predicated region body
PF: predicated region fallthrough
CT: control target
= control target key end

     0   :  { %7 = vsyncpa [#allocation3], 0  ;;  %s803_s0 = inlined_call_operand.hbm [shape: f32[16,128], index: 0, kind: input, shape index: {}]   ;;  %s804_s1 = inlined_call_operand.hbm [shape: f32[16,128], index: 1, kind: input, shape index: {}]   ;;  %s805_s2 = inlined_call_operand.hbm [shape: f32[16,128], index: 2, kind: output, shape index: {}]  }
   0x1   :  { %9 = vsyncpa [#allocation3 + $0x1], 0 }
   0x2   :  { %10 = vsyncpa [#allocation6], 0 }
   0x3   :  { %12 = vsyncpa [#allocation6 + $0x1], 0 }
   0x4   :  { %13 = vsyncpa [#allocation4], 0 }
   0x5   :  { %15 = vsyncpa [#allocation4 + $0x1], 0  ;;  %s637_s9 = smov 0   ;;  %s639_s10 = smov 0  }
   0x6   :  { %s641_s11 = smov 0   ;;  %s643_s12 = smov 0  }
   0x7   :  { %s645_s13 = smov 0   ;;  %s647_s14 = smov 0  }
   0x8 LB: > { %s385_s15 = sadd.s32 4294967295, %s617_s14   ;;  %s386_s16 = sadd.s32 4294967294, %s617_s14   ;;  %s617_s14 = sphi %s647_s14, %s21_s14   ;;  %s613_s13 = sphi %s645_s13, %s817_s13   ;;  %s609_s12 = sphi %s643_s12, %s816_s12   ;;  %s605_s11 = sphi %s641_s11, %s815_s11   ;;  %s601_s10 = sphi %s639_s10, %s814_s10   ;;  %s597_s9 = sphi %s637_s9, %s813_s9  }
   0x9   : > { %s33_s17 = sadd.s32 1, %s613_s13  ;;  %s42_s18 = sadd.s32 1, %s605_s11 }
   0xa   : > { %p35_p0 = scmp.ge.s32.totalorder %s33_s17, 2  ;;  %p49_p1 = scmp.ne.s32.totalorder %s605_s11, %s601_s10 }
   0xb   : > { %p50_p2 = scmp.eq.s32.totalorder %s617_s14, 0  ;;  %p55_p3 = scmp.ne.s32.totalorder %s601_s10, %s597_s9 }
   0xc   : > { %s819_s17 = smov (%p35_p0, %s33_s17), 0  ;;  %p56_p5 = scmp.eq.s32.totalorder %s385_s15, 0 }
   0xd   : > { %p678_p4 = por %p50_p2, %p49_p1  ;;  %s39_s20 = ssub.s32 %s613_s13, %s819_s17 }
   0xe   : > { %p107_p6 = scmp.eq.s32.totalorder %s385_s15, 1  ;;  %p40_p7 = scmp.eq.s32.totalorder %s39_s20, 0 }
   0xf   : > { %p684_p8 = por %p56_p5, %p55_p3  ;;  %p113_p10 = scmp.eq.s32.totalorder %s386_s16, 1 }
  0x10   : > { %p688_p9 = por %p107_p6, %p49_p1  ;;  %p418_p13 = scmp.lt.s32.totalorder %s617_s14, 2 }
  0x11   : > { %s693_s23 = scalar_select %p40_p7, %s605_s11, %s42_s18  }
  0x12   : > { %p695_p11 = por %p113_p10, %p55_p3  ;;  %s702_s25 = sand.u32 1, %s605_s11  }
  0x13   : > { %s389_s26 = sshll.u32 %s702_s25, 3  ;;  %s390_s27 = sshll.u32 %s613_s13, 7 }
  0x14   : > { %s143_s30 = scalar_lea.hbm %s803_s0, %s390_s27  ;;  %s137_s3 = scalar_lea.vmem [#allocation2], %s389_s26 }
  0x15   : > { %s145_s4 = sshll.u32 %s137_s3, 4  ;;  %p711_p0 = pnand %p418_p13, %p678_p4  ;;  %s146_s4 = int_to_ptr.vmem [resolvable:$true] %s145_s4 }
  0x16   : > { %p393_p1 = scmp.ge.s32.totalorder %s617_s14, 1  ;;  %p169_p2 = scmp.lt.s32.totalorder %s617_s14, 3 }
  0x17   : > { %s134_s6 = scalar_lea.sflag [#allocation3], %s702_s25  ;;  %p479_p3 = pneg %p711_p0 }
  0x18   : > { %s490_s7 = scalar_lea.vmem %s146_s4, 128  ;;  %s619_s8 = smov [#allocation2]  }
  0x19   : > { %p491_p5 = scmp.ne.s32.totalorder %s146_s4, %s490_s7  ;;  %s495_s15 = sshll.u32 %s619_s8, 4  ;;  %s496_s15 = int_to_ptr.vmem [resolvable:$false] %s495_s15 }
  0x1a   : > { %s497_s16 = scalar_lea.vmem %s496_s15, 256  ;;  %p498_p4 = scmp.lt.s32.totalorder %s146_s4, %s496_s15 }
  0x1b   : > { %p493_p6 = pnand %p491_p5, %p479_p3  ;;  %p499_p10 = scmp.lt.s32.totalorder %s497_s16, %s490_s7 }
  0x1d   : > { %p494_p7 = pneg %p493_p6  ;;  %p500_p13 = por %p499_p10, %p498_p4 }
  0x1f   : > { %p501_p12 = pnand %p500_p13, %p494_p7 }
  0x21   : > { %504 = shalt.err (!%p501_p12)
}
  0x22   : > { %410 = dma.hbm_to_vmem [thread:$0]  (!%p711_p0), %s143_s30, 128, %s146_s4, %s134_s6  }
  0x23   : > { %p729_p5 = pnand %p393_p1, %p169_p2  ;;  %s162_s28 = scalar_lea.hbm %s804_s1, %s390_s27 }
  0x24   : > { %s156_s29 = scalar_lea.vmem [#allocation5], %s389_s26  ;;  %s153_s7 = scalar_lea.sflag [#allocation6], %s702_s25 }
  0x25   : > { %s164_s3 = sshll.u32 %s156_s29, 4  ;;  %s620_s30 = smov [#allocation5]   ;;  %s165_s3 = int_to_ptr.vmem [resolvable:$true] %s164_s3 }
  0x26   : > { %s518_s8 = scalar_lea.vmem %s165_s3, 128  ;;  %s523_s4 = sshll.u32 %s620_s30, 4  ;;  %s524_s4 = int_to_ptr.vmem [resolvable:$false] %s523_s4 }
  0x27   : > { %p519_p12 = scmp.ne.s32.totalorder %s165_s3, %s518_s8  ;;  %s525_s6 = scalar_lea.vmem %s524_s4, 256 }
  0x28   : > { %p526_p1 = scmp.lt.s32.totalorder %s165_s3, %s524_s4  ;;  %p527_p2 = scmp.lt.s32.totalorder %s525_s6, %s518_s8 }
  0x29   : > { %p521_p6 = pnand %p519_p12, %p479_p3 }
  0x2a   : > { %p528_p4 = por %p527_p2, %p526_p1 }
  0x2b   : > { %p522_p7 = pneg %p521_p6 }
  0x2d   : > { %p529_p10 = pnand %p528_p4, %p522_p7 }
  0x2f   : > { %532 = shalt.err (!%p529_p10)
}
  0x30   : > { %413 = dma.hbm_to_vmem [thread:$0]  (!%p711_p0), %s162_s28, 128, %s165_s3, %s153_s7  }
  0x31   : > { %173 = sbr.rel (%p729_p5) target bundleno = 138 (0x8a), region = 28  ;;  %s745_s25 = sand.u32 (!%p729_p5), 1, %s601_s10  }
  0x32   : > { %s748_s26 = sshll.u32 (!%p729_p5), %s745_s25, 3  ;;  %s176_s27 = scalar_lea.sflag (!%p729_p5), [#allocation3], %s745_s25 }
  0x33   : > { %s179_s15 = scalar_lea.vmem (!%p729_p5), [#allocation2], %s748_s26 }
  0x36   : > { %584 = dma.done.wait (%p684_p8), %s176_s27, 128  }
  0x37   : > { %586 = vsyncadd (%p684_p8), %s176_s27, 4294967168  ;;  %s185_s5 = scalar_lea.sflag [#allocation6], %s745_s25  ;;  %s188_s16 = scalar_lea.vmem [#allocation5], %s748_s26 }
  0x38   : > { %588 = dma.done.wait (%p684_p8), %s185_s5, 128  }
  0x39   : > { %590 = vsyncadd (%p684_p8), %s185_s5, 4294967168  ;;  %v221_v0 = vld [vmem:[%s179_s15] sm:$0xff]  ;;  %v222_v7 = vld [vmem:[%s188_s16] sm:$0xff]  ;;  %s398_s21 = sshll.u32 %s609_s12, 7  ;;  %s213_s18 = scalar_lea.vmem [#allocation7], %s748_s26 }
  0x3a   : > { %v223_v1 = vand.u32 2147483647, %v221_v0  ;;  %vm243_vm0 = vcmp.ge.f32.partialorder %v221_v0, 0.0  ;;  %v227_v18 = vmax.f32 %v221_v0, 0.0  ;;  %v228_v19 = vmul.f32 %v222_v7, %v221_v0  ;;  %s282_s19 = sshll.u32 %s213_s18, 4  ;;  %s280_s29 = scalar_lea.hbm %s805_s2, %s398_s21  ;;  %s283_s19 = int_to_ptr.vmem [resolvable:$true] %s282_s19 }
  0x3b   : > { %v251_v20 = vsub.f32 1.0, %v222_v7  ;;  %v250_v24 = vmul.f32 0.25, %v222_v7  ;;  %s269_s3 = scalar_lea.sflag [#allocation4], %s745_s25  ;;  %s533_s7 = scalar_lea.vmem %s283_s19, 128 }
  0x3c   : > { %v224_v2 = vsub.f32 0.0, %v223_v1  ;;  %v229_v23 = vsub.f32 %v227_v18, %v228_v19  ;;  %p534_p8 = scmp.ne.s32.totalorder %s283_s19, %s533_s7  ;;  %s621_s8 = smov [#allocation7]  }
  0x3d   : > { %v252_v25 = vmul.f32 0.75, %v251_v20  ;;  %s537_s30 = sshll.u32 %s621_s8, 4  ;;  %s538_s30 = int_to_ptr.vmem [resolvable:$false] %s537_s30 }
  0x3e   : > { %v225_v3 = vmul.f32 1.442695, %v224_v2  ;;  %p535_p0 = pnand %p534_p8, %p688_p9  ;;  %s539_s4 = scalar_lea.vmem %s538_s30, 256 }
  0x3f   : > { %v253_v28 = vadd.f32 %v252_v25, %v250_v24  ;;  %p540_p13 = scmp.lt.s32.totalorder %s283_s19, %s538_s30  ;;  %p541_p5 = scmp.lt.s32.totalorder %s539_s4, %s533_s7 }
  0x40   : > { %469 = vpow2.f32 %v225_v3  ;;  %p536_p3 = pneg %p535_p0 }
  0x41   : > { %p542_p12 = por %p541_p5, %p540_p13 }
  0x43   : > { %p543_p6 = pnand %p542_p12, %p536_p3 }
  0x4d   : > { %v470_v4 = vpop.eup %469 }
  0x4e   : > { %v230_v5 = vadd.f32 1.0, %v470_v4  ;;  %v233_v13 = vmul.f32 -0.5, %v470_v4  ;;  %v236_v17 = vand.u32 2147483647, %v470_v4 }
  0x50   : > { %471 = vrcp.f32 %v230_v5  ;;  %v234_v15 = vadd.f32 1.0, %v233_v13  ;;  %vm237_vm1 = vcmp.lt.f32.partialorder %v236_v17, 0.0004427343 }
  0x51   : > { %473 = vlog2.f32 %v230_v5 }
  0x52   : > { %v235_v22 = vmul.f32 %v470_v4, %v234_v15 }
  0x5d   : > { %v472_v6 = vpop.eup %471 }
  0x5e   : > { %v244_v8 = vmul.f32 %v472_v6, %v470_v4  ;;  %v474_v16 = vpop.eup %473 }
  0x5f   : > { %v232_v21 = vmul.f32 0.6931472, %v474_v16 }
  0x60   : > { %v245_v9 = vsel %vm243_vm0, %v472_v6, %v244_v8 }
  0x61   : > { %v246_v10 = vadd.f32 %v245_v9, %v222_v7  ;;  %v247_v11 = vmul.f32 2.0, %v245_v9  ;;  %v238_v26 = vsel %vm237_vm1, %v235_v22, %v232_v21 }
  0x62   : > { %v239_v27 = vadd.f32 %v238_v26, %v229_v23 }
  0x63   : > { %v248_v12 = vmul.f32 %v247_v11, %v222_v7 }
  0x64   : > { %v262_v33 = vmul.f32 %v253_v28, %v239_v27 }
  0x65   : > { %v249_v14 = vsub.f32 %v246_v10, %v248_v12 }
  0x67   : > { %475 = vrsqrt.f32 %v249_v14  ;;  %vm256_vm2 = vcmp.eq.f32.partialorder %v249_v14, inf  ;;  %v259_v30 = vand.u32 2147483648, %v249_v14  ;;  %vm258_vm3 = vcmp.eq.f32.partialorder %v249_v14, 0.0 }
  0x74   : > { %v476_v29 = vpop.eup %475 }
  0x75   : > { %v255_v31 = vmul.f32 %v476_v29, %v249_v14 }
  0x77   : > { %v257_v32 = vsel %vm256_vm2, %v249_v14, %v255_v31 }
  0x78   : > { %v260_v34 = vsel %vm258_vm3, %v259_v30, %v257_v32 }
  0x79   : > { %v261_v35 = vmul.f32 %v260_v34, %v249_v14 }
  0x7b   : > { %v263_v36 = vmul.f32 %v262_v33, %v261_v35 }
  0x7d   : > { %267 = vst [vmem:[%s213_s18] sm:$0xff] %v263_v36 }
  0x7e   : > { %546 = shalt.err (!%p543_p6)
}
  0x7f   : > { %s547_s12 = scalar_lea.hbm %s280_s29, 128  ;;  %s551_s26 = scalar_lea.hbm %s805_s2, 256 }
  0x80   : > { %p548_p7 = scmp.ne.s32.totalorder %s280_s29, %s547_s12  ;;  %p552_p4 = scmp.lt.s32.totalorder %s280_s29, %s805_s2 }
  0x81   : > { %p553_p10 = scmp.lt.s32.totalorder %s551_s26, %s547_s12 }
  0x82   : > { %p549_p1 = pnand %p548_p7, %p688_p9 }
  0x83   : > { %p554_p8 = por %p553_p10, %p552_p4 }
  0x84   : > { %p550_p2 = pneg %p549_p1 }
  0x86   : > { %p555_p0 = pnand %p554_p8, %p550_p2 }
  0x88   : > { %558 = shalt.err (!%p555_p0)
}
  0x89   : > { %405 = dma.vmem_to_hbm [thread:$0]  (%p688_p9), %s283_s19, 128, %s280_s29, %s269_s3  }
  0x8a PF: > { %s294_s5 = sand.u32 1, %s597_s9   ;;  %p812_p3 = scmp.ge.s32.totalorder %s617_s14, 2 }
  0x8b   : > { %s295_s16 = scalar_lea.sflag [#allocation4], %s294_s5 }
  0x8c   : > { %p415_p13 = pnand %p812_p3, %p695_p11 }
  0x8e   : > { %p416_p5 = pneg %p415_p13 }
  0x90   : > { %592 = dma.done.wait (%p416_p5), %s295_s16, 128  }
  0x91   : > { %594 = vsyncadd (%p416_p5), %s295_s16, 4294967168  ;;  %s21_s14 = sadd.s32 1, %s617_s14   ;;  %s813_s9 = smov %s601_s10 }
  0x92   : > { %p18_p12 = scmp.ge.s32.totalorder %s21_s14, 4   ;;  %s814_s10 = smov %s605_s11 }
  0x93   : > { %s815_s11 = smov %s693_s23  ;;  %s816_s12 = smov %s613_s13 }
  0x94   : > { %s817_s13 = smov %s819_s17  ;;  %20 = sbr.rel (!%p18_p12) target bundleno = 8 (0x8), region = 90 }
  0x99   :  { %300 = vsyncpa [#allocation3], 1 }
  0x9a   :  { %302 = vsyncpa [#allocation3 + $0x1], 1 }
  0x9b   :  { %303 = vsyncpa [#allocation6], 1 }
  0x9c   :  { %305 = vsyncpa [#allocation6 + $0x1], 1 }
  0x9d   :  { %306 = vsyncpa [#allocation4], 1 }
  0x9e   :  { %308 = vsyncpa [#allocation4 + $0x1], 1 }

</bundles_post_ra>
